<compile_context>
chip_gen: v6e
topology: v6e:2x2x1
jax: 0.10.0
libtpu: 0.0.40
codegen_flags: <defaults>
</compile_context>

<pallas_src>
import math

import jax
import jax.numpy as jnp
from jax import lax
from jax.experimental import pallas as pl
from jax.experimental.pallas import tpu as pltpu


def _vmem_capacity_bytes():
    try:
        return int(pltpu.get_tpu_info().vmem_capacity_bytes)
    except Exception:
        return 64 << 20  # conservative default (v7x per-TC physical VMEM)


def _vmem_need(B, D, tb, tk, itemsize):
    """Rough VMEM budget for a (tb, tk) tiling."""
    nk = D // tk
    scratch = 0 if nk == 1 else 2 * tb * B * 4      # two f32 Gram accumulators
    slabs = 2 * 2 * B * tk * itemsize                # 2 tensors, double-buffered slabs
    outs = 2 * max(tb, 8) * 128 * 4                  # padded (TB, 1) output blocks
    epilogue = 4 * tb * max(B, 128) * 4              # cc()/diff temporaries headroom
    return scratch + slabs + outs + epilogue


def _select_tiles(B, D, itemsize, vmem_budget):
    """Largest row tile first (slab re-streaming scales as B/TB), then largest K tile."""
    tb_cands = [B] + [t for t in (2048, 1024, 512, 256, 128, 64, 32, 16, 8)
                      if t < B and B % t == 0]
    tk_cands = [D] + [t for t in (2048, 1024, 512, 256, 128)
                      if t < D and D % t == 0]
    for tb in tb_cands:
        for tk in tk_cands:
            if _vmem_need(B, D, tb, tk, itemsize) <= vmem_budget:
                return tb, tk
    return tb_cands[-1], tk_cands[-1]


def make_cckd_loss(batch_size, feat_dim, kernel_params, reduction="batchmean",
                   row_tile=None, k_tile=None, matmul_dtype=None,
                   input_dtype=jnp.float32):
    """Build (student_linear_outputs, teacher_linear_outputs) -> scalar CCKD loss."""
    kernel_type = kernel_params["type"]
    if kernel_type == "gaussian":
        gamma = float(kernel_params["gamma"])
        max_p = int(kernel_params["max_p"])
        # Horner coefficients with exp(-2*gamma) folded in:
        #   cc(g) = sum_p [exp(-2*gamma) * (2*gamma)^p / p!] * g^p
        coeffs = [math.exp(-2.0 * gamma) * (2.0 * gamma) ** p / math.factorial(p)
                  for p in range(max_p + 1)]
    elif kernel_type != "bilinear":
        raise ValueError("kernel_type `{}` is not expected".format(kernel_type))

    B, D = int(batch_size), int(feat_dim)
    compute_dtype = jnp.dtype(matmul_dtype) if matmul_dtype is not None else jnp.dtype(input_dtype)
    itemsize = compute_dtype.itemsize

    vmem_cap = _vmem_capacity_bytes()
    if row_tile is None or k_tile is None:
        tb_auto, tk_auto = _select_tiles(B, D, itemsize, int(vmem_cap * 0.6))
    TB = int(row_tile) if row_tile is not None else tb_auto
    TK = int(k_tile) if k_tile is not None else tk_auto
    assert B % TB == 0 and D % TK == 0
    assert TB == B or TB % 8 == 0, "row tile must be sublane-aligned or full batch"
    assert TK == D or TK % 128 == 0, "k tile must be lane-aligned or full feature dim"
    nrt, nk = B // TB, D // TK

    need = _vmem_need(B, D, TB, TK, itemsize)
    vmem_limit = int(max(32 << 20, min(int(need * 1.3) + (2 << 20), vmem_cap)))

    scale = 1.0 / float(B * B) if reduction == "batchmean" else 1.0

    def _cc(g):
        if kernel_type == "bilinear":
            return g
        acc = jnp.full_like(g, coeffs[max_p])
        for p in range(max_p - 1, -1, -1):
            acc = acc * g + coeffs[p]
        return acc

    # Contract the feature (last) dim of both operands: (TB,TK) x (B,TK) -> (TB,B).
    dn = (((1,), (1,)), ((), ()))

    def _gram_blocks(s_ref, t_ref):
        i = pl.program_id(0)
        row = pl.ds(pl.multiple_of(i * TB, TB), TB)
        # Native-dtype operands straight to the MXU; f32 accumulation.
        gs = lax.dot_general(s_ref[row, :], s_ref[...], dn,
                             preferred_element_type=jnp.float32)
        gt = lax.dot_general(t_ref[row, :], t_ref[...], dn,
                             preferred_element_type=jnp.float32)
        return gs, gt

    def _epilogue(gs, gt, out_ref):
        d = _cc(gs) - _cc(gt)
        out_ref[...] = jnp.sum(d * d, axis=1, keepdims=True)

    if nk == 1:
        # Single K tile: no k-axis reduction, no Gram scratch round-trip.
        def kernel(s_ref, t_ref, out_ref):
            gs, gt = _gram_blocks(s_ref, t_ref)
            _epilogue(gs, gt, out_ref)

        grid = (nrt,)
        in_specs = [pl.BlockSpec((B, D), lambda i: (0, 0)),
                    pl.BlockSpec((B, D), lambda i: (0, 0))]
        out_spec = pl.BlockSpec((TB, 1), lambda i: (i, 0))
        scratch_shapes = []
        dim_sem = ("parallel",)
    else:
        def kernel(s_ref, t_ref, out_ref, gs_acc, gt_acc):
            k = pl.program_id(1)
            gs, gt = _gram_blocks(s_ref, t_ref)

            @pl.when(k == 0)
            def _():
                # First partial product written directly (no zero-fill + RMW).
                gs_acc[...] = gs
                gt_acc[...] = gt

            @pl.when(k != 0)
            def _():
                gs_acc[...] += gs
                gt_acc[...] += gt

            @pl.when(k == pl.num_programs(1) - 1)
            def _():
                _epilogue(gs_acc[...], gt_acc[...], out_ref)

        grid = (nrt, nk)
        in_specs = [pl.BlockSpec((B, TK), lambda i, k: (0, k)),
                    pl.BlockSpec((B, TK), lambda i, k: (0, k))]
        out_spec = pl.BlockSpec((TB, 1), lambda i, k: (i, 0))
        scratch_shapes = [pltpu.VMEM((TB, B), jnp.float32),
                          pltpu.VMEM((TB, B), jnp.float32)]
        # Row-tile axis is independent (per-tile partial outputs) -> parallel;
        # K axis feeds the resident accumulators -> arbitrary (and last).
        dim_sem = ("parallel", "arbitrary")

    pallas_fn = pl.pallas_call(
        kernel,
        out_shape=jax.ShapeDtypeStruct((B, 1), jnp.float32),
        grid_spec=pltpu.PrefetchScalarGridSpec(
            num_scalar_prefetch=0,
            grid=grid,
            in_specs=in_specs,
            out_specs=out_spec,
            scratch_shapes=scratch_shapes),
        compiler_params=pltpu.CompilerParams(
            dimension_semantics=dim_sem,
            vmem_limit_bytes=vmem_limit),
    )

    @jax.jit
    def loss_fn(student_linear_outputs, teacher_linear_outputs):
        s, t = student_linear_outputs, teacher_linear_outputs
        # TODO(synk): differing student/teacher feature dims are not handled
        # (same embedding dim assumed, as in the torchdistill usage).
        assert s.shape == (B, D) and t.shape == (B, D)
        if matmul_dtype is not None:
            s = s.astype(matmul_dtype)
            t = t.astype(matmul_dtype)
        partials = pallas_fn(s, t)                 # (B, 1) per-row sums of squared diffs
        return jnp.sqrt(jnp.sum(partials)) * scale

    return loss_fn


def _reference_cckd(s, t, kernel_params, reduction):
    """Pure-JAX reference mirroring CCKDLoss.forward."""
    ktype = kernel_params["type"]

    def cc(x):
        g = x.astype(jnp.float32) @ x.astype(jnp.float32).T
        if ktype == "bilinear":
            return g
        gamma = kernel_params["gamma"]
        max_p = kernel_params["max_p"]
        row = jnp.ones_like(g)
        for p in range(1, max_p + 1):
            row = row + ((2.0 * gamma) ** p / math.factorial(p)) * g ** p
        return row * math.exp(-2.0 * gamma)

    d = cc(s) - cc(t)
    loss = jnp.sqrt(jnp.sum(d * d))
    b = s.shape[0]
    return loss / (b ** 2) if reduction == "batchmean" else loss


if __name__ == "__main__":
    key = jax.random.PRNGKey(0)

    def run_case(B, D, kernel_params, reduction="batchmean", rtol=1e-4, atol=1e-5, **kw):
        seed = B * 10000 + D * 10 + len(kernel_params)
        ks, kt = jax.random.split(jax.random.fold_in(key, seed))
        student = jax.random.normal(ks, (B, D), dtype=jnp.float32)
        teacher = jax.random.normal(kt, (B, D), dtype=jnp.float32)

        loss_fn = make_cckd_loss(B, D, kernel_params, reduction=reduction, **kw)
        out = jax.block_until_ready(loss_fn(student, teacher))

        s_ref, t_ref = student, teacher
        if kw.get("matmul_dtype") is not None:
            s_ref = student.astype(kw["matmul_dtype"])
            t_ref = teacher.astype(kw["matmul_dtype"])
        ref = _reference_cckd(s_ref, t_ref, kernel_params, reduction)
        assert jnp.allclose(out, ref, rtol=rtol, atol=atol), \
            (kernel_params, (B, D), kw, float(out), float(ref))

    gaussian = {"type": "gaussian", "gamma": 0.4, "max_p": 2}
    # Small single-tile cases.
    run_case(8, 32, {"type": "bilinear"})
    run_case(8, 32, gaussian)
    run_case(8, 32, gaussian, reduction="sum")
    # Single-K, multiple row tiles (tests in-kernel row slicing + per-tile outputs).
    run_case(16, 256, {"type": "bilinear"}, row_tile=8)
    # Multi-K accumulate path (tests k==0 assign / k!=0 add / last-k epilogue).
    run_case(16, 256, gaussian, row_tile=8, k_tile=128)
    # Native-bf16 MXU path (wrapper downcast), looser tolerance.
    run_case(16, 256, gaussian, matmul_dtype=jnp.bfloat16, rtol=5e-3, atol=1e-4)

    print("KERNEL_OK")
</pallas_src>

<mosaic_0001>
module attributes {stable_mosaic.version = 11 : i64} {
  func.func @kernel(%arg0: i32, %arg1: memref<8x32xf32, #tpu.memory_space<vmem>>, %arg2: memref<8x32xf32, #tpu.memory_space<vmem>>, %arg3: memref<8x1xf32, #tpu.memory_space<vmem>>) attributes {dimension_semantics = [#tpu.dimension_semantics<parallel>], iteration_bounds = array<i64: 1>, scalar_prefetch = 0 : i64, scratch_operands = 0 : i64, tpu.core_type = #tpu.core_type<tc>, window_params = [{pipeline_mode = #tpu.pipeline_mode<synchronous>, transform_indices = @transform_0, window_bounds = array<i64: 8, 32>}, {pipeline_mode = #tpu.pipeline_mode<synchronous>, transform_indices = @transform_1, window_bounds = array<i64: 8, 32>}, {transform_indices = @transform_2, window_bounds = array<i64: 8, 1>}]} {
    %c8_i32 = arith.constant 8 : i32
    %0 = arith.muli %arg0, %c8_i32 : i32
    %1 = tpu.assume_multiple %0, 8 : i32
    %2 = arith.index_cast %1 : i32 to index
    %c0 = arith.constant 0 : index
    %3 = vector.load %arg1[%2, %c0] : memref<8x32xf32, #tpu.memory_space<vmem>>, vector<8x32xf32>
    %c0_0 = arith.constant 0 : index
    %c0_1 = arith.constant 0 : index
    %4 = vector.load %arg1[%c0_0, %c0_1] : memref<8x32xf32, #tpu.memory_space<vmem>>, vector<8x32xf32>
    %cst = arith.constant dense<0.000000e+00> : vector<8x8xf32>
    %5 = tpu.matmul %3, %4, %cst {dimension_numbers = #tpu.dot_dimension_numbers<[1], [1], [0], [0], [0, 0, 1, 0], [], []>} : vector<8x32xf32>, vector<8x32xf32>, vector<8x8xf32> -> vector<8x8xf32>
    %6 = arith.index_cast %1 : i32 to index
    %c0_2 = arith.constant 0 : index
    %7 = vector.load %arg2[%6, %c0_2] : memref<8x32xf32, #tpu.memory_space<vmem>>, vector<8x32xf32>
    %c0_3 = arith.constant 0 : index
    %c0_4 = arith.constant 0 : index
    %8 = vector.load %arg2[%c0_3, %c0_4] : memref<8x32xf32, #tpu.memory_space<vmem>>, vector<8x32xf32>
    %cst_5 = arith.constant dense<0.000000e+00> : vector<8x8xf32>
    %9 = tpu.matmul %7, %8, %cst_5 {dimension_numbers = #tpu.dot_dimension_numbers<[1], [1], [0], [0], [0, 0, 1, 0], [], []>} : vector<8x32xf32>, vector<8x32xf32>, vector<8x8xf32> -> vector<8x8xf32>
    %10 = arith.subf %5, %9 : vector<8x8xf32>
    %11 = arith.mulf %10, %10 : vector<8x8xf32>
    %cst_6 = arith.constant dense<0.000000e+00> : vector<8xf32>
    %12 = vector.multi_reduction <add>, %11, %cst_6 [1] : vector<8x8xf32> to vector<8xf32>
    %13 = vector.shape_cast %12 : vector<8xf32> to vector<8x1xf32>
    %c0_7 = arith.constant 0 : index
    %c0_8 = arith.constant 0 : index
    %14 = vector.load %arg3[%c0_7, %c0_8] : memref<8x1xf32, #tpu.memory_space<vmem>>, vector<8x1xf32>
    tpu.vector_store %arg3[%c0_7, %c0_8], %13 {strides = array<i32>} : memref<8x1xf32, #tpu.memory_space<vmem>>, vector<8x1xf32>,
    return
  }
  func.func @transform_0(%arg0: i32) -> (i32, i32) {
    %c0_i32 = arith.constant 0 : i32
    %c0_i32_0 = arith.constant 0 : i32
    %c0_i32_1 = arith.constant 0 : i32
    return %c0_i32, %c0_i32_0 : i32, i32
  }
  func.func @transform_1(%arg0: i32) -> (i32, i32) {
    %c0_i32 = arith.constant 0 : i32
    %c0_i32_0 = arith.constant 0 : i32
    %c0_i32_1 = arith.constant 0 : i32
    return %c0_i32, %c0_i32_0 : i32, i32
  }
  func.func @transform_2(%arg0: i32) -> (i32, i32) {
    %c0_i32 = arith.constant 0 : i32
    %c0_i32_0 = arith.constant 0 : i32
    return %arg0, %c0_i32 : i32, i32
  }
}

</mosaic_0001>

<bundles_post_ra>
// kernel: loss_fn.1
= control target key start
LH: loop header
LB: loop body
LE: loop exit
PB: predicated region body
PF: predicated region fallthrough
CT: control target
= control target key end

     0   :  { %7 = vsyncpa [#allocation3], 0  ;;  %s303_s0 = inlined_call_operand.hbm [shape: f32[8,32], index: 0, kind: input, shape index: {}]   ;;  %s304_s1 = inlined_call_operand.hbm [shape: f32[8,32], index: 1, kind: input, shape index: {}]   ;;  %s305_s2 = inlined_call_operand.vmem [shape: f32[8,1], index: 2, kind: output, shape index: {}]  }
   0x1   :  { %8 = vsyncpa [#allocation5], 0  ;;  %s275_s9 = smov [#allocation2]   ;;  %s276_s11 = smov [#allocation4]  }
   0x2   :  { %s15_s10 = sshll.u32 %s275_s9, 4  ;;  %s25_s12 = sshll.u32 %s276_s11, 4  ;;  %s16_s10 = int_to_ptr.vmem [resolvable:$true] %s15_s10  ;;  %s26_s12 = int_to_ptr.vmem [resolvable:$true] %s25_s12 }
   0x3   :  { %s239_s13 = scalar_lea.vmem %s16_s10, 128  ;;  %p244_p1 = scmp.lt.s32.totalorder %s16_s10, %s16_s10 }
   0x4   :  { %p240_p0 = scmp.ne.s32.totalorder %s16_s10, %s239_s13  ;;  %p245_p2 = scmp.lt.s32.totalorder %s239_s13, %s239_s13 }
   0x6   :  { %p246_p3 = por %p245_p2, %p244_p1 }
   0x8   :  { %p247_p4 = pnand %p246_p3, %p240_p0 }
   0xa   :  { %250 = shalt.err (!%p247_p4)
}
   0xb   :  { %18 = dma.hbm_to_vmem [thread:$0]  %s303_s0, 128, %s16_s10, [#allocation3]  }
   0xc   :  { %s259_s16 = scalar_lea.vmem %s26_s12, 128  ;;  %p264_p6 = scmp.lt.s32.totalorder %s26_s12, %s26_s12 }
   0xd   :  { %p260_p5 = scmp.ne.s32.totalorder %s26_s12, %s259_s16  ;;  %p265_p7 = scmp.lt.s32.totalorder %s259_s16, %s259_s16 }
   0xf   :  { %p266_p8 = por %p265_p7, %p264_p6 }
  0x11   :  { %p267_p9 = pnand %p266_p8, %p260_p5 }
  0x13   :  { %270 = shalt.err (!%p267_p9)
}
  0x14   :  { %28 = dma.hbm_to_vmem [thread:$0]  %s304_s1, 128, %s26_s12, [#allocation5]  }
  0x15   :  { %271 = dma.done.wait [#allocation3], 128  }
  0x16   :  { %272 = vsyncadd [#allocation3], 4294967168 }
  0x17   :  { %273 = dma.done.wait [#allocation5], 128  }
  0x18   :  { %274 = vsyncadd [#allocation5], 4294967168  ;;  %v277_v0 = vmov 0.0   ;;  %vm278_vm0 = vmmov 0   ;;  %vm39_vm1 = vcmask 261120   ;;  %v38_v1 = vld [vmem:[#allocation2] sm:$0xff] }
  0x19   :  { %217 = vmatprep.subr.mxu0 %v277_v0  ;;  %222 = vmatprep.subr.mxu1 %v277_v0  ;;  %v118_v2 = vld [vmem:[#allocation4] sm:$0xff]  ;;  %vm197_vm2 = vcmask 64512   ;;  %vm201_vm3 = vcmask 7168  }
  0x1a   :  { %219 = vmatprep.mubr.msk.f32.mxu0 %vm278_vm0, %v277_v0  ;;  %224 = vmatprep.mubr.msk.f32.mxu1 %vm278_vm0, %v277_v0 }
  0x1b   :  { %218 = vmatpush3.xpose.msk.msra.mxu0 %vm39_vm1, %v38_v1  ;;  %223 = vmatpush3.xpose.msk.msra.mxu1 %vm39_vm1, %v118_v2 }
  0x1e   :  { %220 = vmatmul.mubr.msk.f32.vlgmr.msra.gmra.mxu0 %vm39_vm1, %v38_v1  ;;  %225 = vmatmul.mubr.msk.f32.vlgmr.msra.gmra.mxu1 %vm39_vm1, %v118_v2 }
  0xde   :  { %v112_v3 = vpop.f32.mrf.mxu0  ;;  %v191_v4 = vpop.f32.mrf.mxu1 }
  0xdf   :  { %v195_v5 = vsub.f32 %v112_v3, %v191_v4 }
  0xe0   :  { %v221_v6 = vpop.f32.mrf.mxu0  ;;  %v226_v7 = vpop.f32.mrf.mxu1 }
  0xe1   :  { %v196_v8 = vmul.f32 %v195_v5, %v195_v5 }
  0xe3   :  { %v198_v9 = vsel %vm197_vm2, %v196_v8, 0.0 }
  0xe4   :  { %199 = vadd.xlane.f32.xlu0 %v198_v9 }
 0x16d   :  { %v200_v10 = vpop.xlane.xlu0 %199 }
 0x16e   :  { %202 = vst.msk [vmem:[%s305_s2] sm:$0xff] %vm201_vm3, %v200_v10 }
 0x16f   :  { %207 = vsyncpa [#allocation3], 1 }
 0x170   :  { %208 = vsyncpa [#allocation5], 1 }

</bundles_post_ra>
